<compile_context>
chip_gen: v7x
topology: tpu7x:2x2x1
jax: 0.10.0
libtpu: 0.0.40
codegen_flags: <defaults>
</compile_context>

<pallas_src>
import functools
import math

import jax
import jax.numpy as jnp
import numpy as np
from jax.experimental import pallas as pl
from jax.experimental.pallas import tpu as pltpu

LN_EPS = 1e-5
_INV_SQRT2 = 1.0 / math.sqrt(2.0)


def _wave_tail_kernel(x_ref, w1_ref, b1_ref, w2_ref, b2_ref, o_ref, *, seq_len):
    # x_ref block: (TB*S, E) -- TB batch elements, rows flattened together.
    x = x_ref[...]                                        # (TB*S, E) f32
    rows, _ = x.shape
    tb = rows // seq_len

    # Two-pass LayerNorm statistics over the embedding (lane) dim. The gamma/beta affine is
    # already folded into w1/b1 by the wrapper.
    mu = jnp.mean(x, axis=-1, keepdims=True)
    d = x - mu
    var = jnp.mean(d * d, axis=-1, keepdims=True)
    xn = d * jax.lax.rsqrt(var + LN_EPS)

    # Linear(E -> H): one big MXU matmul for all TB*S rows.
    h = jnp.dot(xn, w1_ref[...], preferred_element_type=jnp.float32) + b1_ref[...]

    # Exact erf GELU (matches torch.nn.GELU default).
    h = 0.5 * h * (1.0 + jax.lax.erf(h * _INV_SQRT2))

    # Mean over the sequence first (Linear2 is affine, so it commutes with the mean),
    # then contract with w2 on the VPU/XLU instead of an N=1 MXU matmul.
    hm = jnp.mean(h.reshape(tb, seq_len, h.shape[-1]), axis=1)               # (TB, H)
    o_ref[...] = jnp.sum(hm * w2_ref[...], axis=-1, keepdims=True) + b2_ref[0, 0]  # (TB, 1)


def wave_tail(x, gamma, beta, w1, b1, w2, b2, rows_per_step=512):
    B, S, E = x.shape
    H = w1.shape[1]

    # TB batch elements per grid step; keep TB*S a sublane (8) multiple whenever we tile.
    unit = 8 // math.gcd(S, 8)                              # smallest TB granule s.t. TB*S % 8 == 0
    tb = max(unit, (max(1, rows_per_step // S) // unit) * unit)
    tb = min(tb, ((B + unit - 1) // unit) * unit)           # don't exceed the (rounded) batch
    b_pad = ((B + tb - 1) // tb) * tb
    n_blocks = b_pad // tb

    xp = x if b_pad == B else jnp.pad(x, ((0, b_pad - B), (0, 0), (0, 0)))
    x2 = xp.reshape(b_pad * S, E).astype(jnp.float32)       # rows flattened: (B_pad*S, E)

    # Fold the LayerNorm affine into Linear1 (tiny (E,H)/(1,H) ops, done outside the kernel):
    #   (xn * gamma + beta) @ w1 + b1 == xn @ (gamma[:,None] * w1) + (beta @ w1 + b1)
    w1f = gamma.reshape(E, 1).astype(jnp.float32) * w1.astype(jnp.float32)   # (E, H)
    b1f = beta.reshape(1, E).astype(jnp.float32) @ w1.astype(jnp.float32) \
        + b1.reshape(1, H).astype(jnp.float32)                               # (1, H)
    w2_row = w2.reshape(1, H).astype(jnp.float32)            # (H,1) -> (1,H) row for VPU contraction

    # TODO(synk): if E*H*4 bytes ever exceeds ~24 MiB (v7x VMEM budget), add an H-tiling grid axis
    # with a VMEM accumulator instead of keeping w1 fully resident.
    kernel = functools.partial(_wave_tail_kernel, seq_len=S)
    out = pl.pallas_call(
        kernel,
        out_shape=jax.ShapeDtypeStruct((b_pad, 1), jnp.float32),
        grid=(n_blocks,),
        in_specs=[
            pl.BlockSpec((tb * S, E), lambda b: (b, 0)),          # x rows, TB*S per step
            pl.BlockSpec((E, H), lambda b: (0, 0)),               # Linear1 weight (LN gamma folded)
            pl.BlockSpec((1, H), lambda b: (0, 0)),               # Linear1 bias   (LN beta folded)
            pl.BlockSpec((1, H), lambda b: (0, 0)),               # Linear2 weight as a row
            pl.BlockSpec(memory_space=pltpu.MemorySpace.SMEM),    # Linear2 bias scalar in SMEM
        ],
        # Per-step output block (not resident) -> batch axis is genuinely independent.
        out_specs=pl.BlockSpec((tb, 1), lambda b: (b, 0)),
        compiler_params=pltpu.CompilerParams(dimension_semantics=("parallel",)),
    )(
        x2,
        w1f,
        b1f,
        w2_row,
        b2.reshape(1, 1).astype(jnp.float32),
    )
    return out[:B, 0]  # (B,)


def wave_tail_ref(x, gamma, beta, w1, b1, w2, b2):
    mu = jnp.mean(x, axis=-1, keepdims=True)
    var = jnp.mean((x - mu) ** 2, axis=-1, keepdims=True)
    xn = (x - mu) / jnp.sqrt(var + LN_EPS) * gamma[0] + beta[0]
    h = xn @ w1 + b1[0]
    h = 0.5 * h * (1.0 + jax.lax.erf(h * _INV_SQRT2))
    y = h @ w2 + b2[0]                # (B, S, 1)
    y = y.reshape(*y.shape[:-2], -1)  # Flatten(start_dim=-2) -> (B, S)
    return jnp.mean(y, axis=-1)       # (B,)


if __name__ == "__main__":
    B, S, E, H = 2, 8, 32, 32

    key = jax.random.PRNGKey(0)
    kx, kw1, kb1, kw2, kb2 = jax.random.split(key, 5)

    x = jax.random.normal(kx, (B, S, E), dtype=jnp.float32)

    # Deterministic synthetic parameters (shapes match torch module __init__).
    gamma = jnp.ones((1, E), dtype=jnp.float32)   # LayerNorm weight (default init)
    beta = jnp.zeros((1, E), dtype=jnp.float32)   # LayerNorm bias (default init)
    w1 = (jax.random.uniform(kw1, (E, H), dtype=jnp.float32) - 0.5) * (2.0 / math.sqrt(E))
    b1 = (jax.random.uniform(kb1, (1, H), dtype=jnp.float32) - 0.5) * (2.0 / math.sqrt(E))
    w2 = (jax.random.uniform(kw2, (H, 1), dtype=jnp.float32) - 0.5) * (2.0 / math.sqrt(H))
    b2 = (jax.random.uniform(kb2, (1, 1), dtype=jnp.float32) - 0.5) * (2.0 / math.sqrt(H))

    out = jax.block_until_ready(wave_tail(x, gamma, beta, w1, b1, w2, b2))
    ref = jax.block_until_ready(wave_tail_ref(x, gamma, beta, w1, b1, w2, b2))

    np.testing.assert_allclose(np.asarray(out), np.asarray(ref), rtol=1e-5, atol=1e-5)
    print("KERNEL_OK")
</pallas_src>

<mosaic_0001>
module attributes {stable_mosaic.version = 11 : i64} {
  func.func @_wave_tail_kernel(%arg0: i32, %arg1: memref<16x32xf32, #tpu.memory_space<vmem>>, %arg2: memref<32x32xf32, #tpu.memory_space<vmem>>, %arg3: memref<1x32xf32, #tpu.memory_space<vmem>>, %arg4: memref<1x32xf32, #tpu.memory_space<vmem>>, %arg5: memref<1x1xf32, #tpu.memory_space<smem>>, %arg6: memref<2x1xf32, #tpu.memory_space<vmem>>) attributes {dimension_semantics = [#tpu.dimension_semantics<parallel>], iteration_bounds = array<i64: 1>, scalar_prefetch = 0 : i64, scratch_operands = 0 : i64, tpu.core_type = #tpu.core_type<tc>, window_params = [{transform_indices = @transform_0, window_bounds = array<i64: 16, 32>}, {pipeline_mode = #tpu.pipeline_mode<synchronous>, transform_indices = @transform_1, window_bounds = array<i64: 32, 32>}, {pipeline_mode = #tpu.pipeline_mode<synchronous>, transform_indices = @transform_2, window_bounds = array<i64: 1, 32>}, {pipeline_mode = #tpu.pipeline_mode<synchronous>, transform_indices = @transform_3, window_bounds = array<i64: 1, 32>}, {transform_indices = @transform_4, window_bounds = array<i64: 1, 1>}, {transform_indices = @transform_5, window_bounds = array<i64: 2, 1>}]} {
    %c0 = arith.constant 0 : index
    %c0_0 = arith.constant 0 : index
    %0 = vector.load %arg1[%c0, %c0_0] : memref<16x32xf32, #tpu.memory_space<vmem>>, vector<16x32xf32>
    %cst = arith.constant dense<0.000000e+00> : vector<16xf32>
    %1 = vector.multi_reduction <add>, %0, %cst [1] : vector<16x32xf32> to vector<16xf32>
    %2 = vector.shape_cast %1 : vector<16xf32> to vector<16x1xf32>
    %cst_1 = arith.constant 3.200000e+01 : f32
    %3 = vector.broadcast %cst_1 : f32 to vector<16x1xf32>
    %4 = arith.divf %2, %3 : vector<16x1xf32>
    %5 = vector.broadcast %4 : vector<16x1xf32> to vector<16x32xf32>
    %6 = arith.subf %0, %5 : vector<16x32xf32>
    %7 = arith.mulf %6, %6 : vector<16x32xf32>
    %cst_2 = arith.constant dense<0.000000e+00> : vector<16xf32>
    %8 = vector.multi_reduction <add>, %7, %cst_2 [1] : vector<16x32xf32> to vector<16xf32>
    %9 = vector.shape_cast %8 : vector<16xf32> to vector<16x1xf32>
    %cst_3 = arith.constant 3.200000e+01 : f32
    %10 = vector.broadcast %cst_3 : f32 to vector<16x1xf32>
    %11 = arith.divf %9, %10 : vector<16x1xf32>
    %cst_4 = arith.constant 9.99999974E-6 : f32
    %12 = vector.broadcast %cst_4 : f32 to vector<16x1xf32>
    %13 = arith.addf %11, %12 : vector<16x1xf32>
    %14 = math.rsqrt %13 : vector<16x1xf32>
    %15 = vector.broadcast %14 : vector<16x1xf32> to vector<16x32xf32>
    %16 = arith.mulf %6, %15 : vector<16x32xf32>
    %c0_5 = arith.constant 0 : index
    %c0_6 = arith.constant 0 : index
    %17 = vector.load %arg2[%c0_5, %c0_6] : memref<32x32xf32, #tpu.memory_space<vmem>>, vector<32x32xf32>
    %cst_7 = arith.constant dense<0.000000e+00> : vector<16x32xf32>
    %18 = tpu.matmul %16, %17, %cst_7 {dimension_numbers = #tpu.dot_dimension_numbers<[1], [0], [0], [1], [0, 0, 1, 1], [], []>} : vector<16x32xf32>, vector<32x32xf32>, vector<16x32xf32> -> vector<16x32xf32>
    %c0_8 = arith.constant 0 : index
    %c0_9 = arith.constant 0 : index
    %19 = vector.load %arg3[%c0_8, %c0_9] : memref<1x32xf32, #tpu.memory_space<vmem>>, vector<1x32xf32>
    %20 = vector.broadcast %19 : vector<1x32xf32> to vector<16x32xf32>
    %21 = arith.addf %18, %20 : vector<16x32xf32>
    %cst_10 = arith.constant 5.000000e-01 : f32
    %22 = vector.broadcast %cst_10 : f32 to vector<16x32xf32>
    %23 = arith.mulf %22, %21 : vector<16x32xf32>
    %cst_11 = arith.constant 0.707106769 : f32
    %24 = vector.broadcast %cst_11 : f32 to vector<16x32xf32>
    %25 = arith.mulf %21, %24 : vector<16x32xf32>
    %26 = math.erf %25 : vector<16x32xf32>
    %cst_12 = arith.constant 1.000000e+00 : f32
    %27 = vector.broadcast %cst_12 : f32 to vector<16x32xf32>
    %28 = arith.addf %27, %26 : vector<16x32xf32>
    %29 = arith.mulf %23, %28 : vector<16x32xf32>
    %30 = vector.shape_cast %29 : vector<16x32xf32> to vector<2x8x32xf32>
    %cst_13 = arith.constant dense<0.000000e+00> : vector<2x32xf32>
    %31 = vector.multi_reduction <add>, %30, %cst_13 [1] : vector<2x8x32xf32> to vector<2x32xf32>
    %cst_14 = arith.constant 8.000000e+00 : f32
    %32 = vector.broadcast %cst_14 : f32 to vector<2x32xf32>
    %33 = arith.divf %31, %32 : vector<2x32xf32>
    %c0_15 = arith.constant 0 : index
    %c0_16 = arith.constant 0 : index
    %34 = vector.load %arg4[%c0_15, %c0_16] : memref<1x32xf32, #tpu.memory_space<vmem>>, vector<1x32xf32>
    %35 = vector.broadcast %34 : vector<1x32xf32> to vector<2x32xf32>
    %36 = arith.mulf %33, %35 : vector<2x32xf32>
    %cst_17 = arith.constant dense<0.000000e+00> : vector<2xf32>
    %37 = vector.multi_reduction <add>, %36, %cst_17 [1] : vector<2x32xf32> to vector<2xf32>
    %38 = vector.shape_cast %37 : vector<2xf32> to vector<2x1xf32>
    %c0_18 = arith.constant 0 : index
    %c0_19 = arith.constant 0 : index
    %39 = memref.load %arg5[%c0_18, %c0_19] : memref<1x1xf32, #tpu.memory_space<smem>>
    %40 = vector.broadcast %39 : f32 to vector<2x1xf32>
    %41 = arith.addf %38, %40 : vector<2x1xf32>
    %c0_20 = arith.constant 0 : index
    %c0_21 = arith.constant 0 : index
    %42 = vector.load %arg6[%c0_20, %c0_21] : memref<2x1xf32, #tpu.memory_space<vmem>>, vector<2x1xf32>
    tpu.vector_store %arg6[%c0_20, %c0_21], %41 {strides = array<i32>} : memref<2x1xf32, #tpu.memory_space<vmem>>, vector<2x1xf32>,
    return
  }
  func.func @transform_0(%arg0: i32) -> (i32, i32) {
    %c0_i32 = arith.constant 0 : i32
    %c0_i32_0 = arith.constant 0 : i32
    return %arg0, %c0_i32 : i32, i32
  }
  func.func @transform_1(%arg0: i32) -> (i32, i32) {
    %c0_i32 = arith.constant 0 : i32
    %c0_i32_0 = arith.constant 0 : i32
    %c0_i32_1 = arith.constant 0 : i32
    return %c0_i32, %c0_i32_0 : i32, i32
  }
  func.func @transform_2(%arg0: i32) -> (i32, i32) {
    %c0_i32 = arith.constant 0 : i32
    %c0_i32_0 = arith.constant 0 : i32
    %c0_i32_1 = arith.constant 0 : i32
    return %c0_i32, %c0_i32_0 : i32, i32
  }
  func.func @transform_3(%arg0: i32) -> (i32, i32) {
    %c0_i32 = arith.constant 0 : i32
    %c0_i32_0 = arith.constant 0 : i32
    %c0_i32_1 = arith.constant 0 : i32
    return %c0_i32, %c0_i32_0 : i32, i32
  }
  func.func @transform_4(%arg0: i32) -> (i32, i32) {
    %c0_i32 = arith.constant 0 : i32
    %c0_i32_0 = arith.constant 0 : i32
    %c0_i32_1 = arith.constant 0 : i32
    return %c0_i32, %c0_i32_0 : i32, i32
  }
  func.func @transform_5(%arg0: i32) -> (i32, i32) {
    %c0_i32 = arith.constant 0 : i32
    %c0_i32_0 = arith.constant 0 : i32
    return %arg0, %c0_i32 : i32, i32
  }
}

</mosaic_0001>

<bundles_post_ra>
// kernel: tpu_custom_call.1
= control target key start
LH: loop header
LB: loop body
LE: loop exit
PB: predicated region body
PF: predicated region fallthrough
CT: control target
= control target key end

     0   :  { %11 = vsyncpa [#allocation4], 0  ;;  %s395_s0 = inlined_call_operand.hbm [shape: f32[16,32], index: 0, kind: input, shape index: {}]   ;;  %s396_s1 = inlined_call_operand.hbm [shape: f32[32,32], index: 1, kind: input, shape index: {}]   ;;  %s397_s2 = inlined_call_operand.vmem [shape: f32[1,32], index: 2, kind: input, shape index: {}]   ;;  %s398_s3 = inlined_call_operand.vmem [shape: f32[1,32], index: 3, kind: input, shape index: {}]   ;;  %s399_s4 = inlined_call_operand.<no memory space> [shape: f32[1,1], index: 4, kind: input, shape index: {}]   ;;  %s400_s5 = inlined_call_operand.vmem [shape: f32[2,1], index: 5, kind: output, shape index: {}]  }
   0x1   :  { %12 = vsyncpa [#allocation6], 0  ;;  %s317_s18 = smov [#allocation3]   ;;  %s269_s22 = scalar_lea.hbm %s395_s0, 256 }
   0x2   :  { %s18_s19 = sshll.u32 %s317_s18, 4  ;;  %p270_p0 = scmp.ne.s32.totalorder %s395_s0, %s269_s22  ;;  %s19_s19 = int_to_ptr.vmem [resolvable:$true] %s18_s19 }
   0x3   :  { %p273_p1 = scmp.lt.u32.totalorder %s269_s22, %s395_s0 }
   0x5   :  { %p275_p2 = pnand %p273_p1, %p270_p0 }
   0x7   :  { %278 = shalt.err (!%p275_p2)
}
   0x8   :  { %s279_s27 = scalar_lea.vmem %s19_s19, 256  ;;  %p284_p4 = scmp.lt.s32.totalorder %s19_s19, %s19_s19 }
   0x9   :  { %p280_p3 = scmp.ne.s32.totalorder %s19_s19, %s279_s27  ;;  %p285_p5 = scmp.lt.s32.totalorder %s279_s27, %s279_s27 }
   0xb   :  { %p286_p6 = por %p285_p5, %p284_p4 }
   0xd   :  { %p287_p7 = pnand %p286_p6, %p280_p3 }
   0xf   :  { %290 = shalt.err (!%p287_p7)
}
  0x10   :  { %s318_s28 = smov 128   ;;  %s319_s29 = smov 8  }
  0x11   :  { %24 = dma.hbm_to_vmem [thread:$0]  %s395_s0, 256, %s19_s19, [#allocation4], %s318_s28, %s318_s28, %s319_s29  }
  0x12   :  { %s320_s7 = smov [#allocation5]   ;;  %s291_s11 = scalar_lea.hbm %s396_s1, 512 }
  0x13   :  { %s30_s8 = sshll.u32 %s320_s7, 4  ;;  %p292_p8 = scmp.ne.s32.totalorder %s396_s1, %s291_s11  ;;  %s31_s8 = int_to_ptr.vmem [resolvable:$true] %s30_s8 }
  0x14   :  { %p295_p9 = scmp.lt.u32.totalorder %s291_s11, %s396_s1 }
  0x16   :  { %p297_p10 = pnand %p295_p9, %p292_p8 }
  0x18   :  { %300 = shalt.err (!%p297_p10)
}
  0x19   :  { %s301_s16 = scalar_lea.vmem %s31_s8, 512  ;;  %p306_p12 = scmp.lt.s32.totalorder %s31_s8, %s31_s8 }
  0x1a   :  { %p302_p11 = scmp.ne.s32.totalorder %s31_s8, %s301_s16  ;;  %p307_p13 = scmp.lt.s32.totalorder %s301_s16, %s301_s16 }
  0x1c   :  { %p308_p0 = por %p307_p13, %p306_p12 }
  0x1e   :  { %p309_p1 = pnand %p308_p0, %p302_p11 }
  0x20   :  { %312 = shalt.err (!%p309_p1)
}
  0x21   :  { %36 = dma.hbm_to_vmem [thread:$0]  %s396_s1, 512, %s31_s8, [#allocation6], %s318_s28, %s318_s28, %s319_s29  }
  0x22   :  { %313 = dma.done.wait [#allocation4], 256  }
  0x23   :  { %314 = vsyncadd [#allocation4], 4294967040 }
  0x24   :  { %315 = dma.done.wait [#allocation6], 512  }
  0x25   :  { %316 = vsyncadd [#allocation6], 4294966784  ;;  %vm51_vm0 = vcmask 261120   ;;  %v49_v0 = vld [vmem:[#allocation3] sm:$0xff]  ;;  %v50_v1 = vld [vmem:[#allocation3 + $0x8] sm:$0xff]  ;;  %vm210_vm1 = vcmask 1041409  }
  0x26   :  { %v52_v2 = vsel %vm51_vm0, %v49_v0, 0.0  ;;  %v55_v3 = vsel %vm51_vm0, %v50_v1, 0.0  ;;  %v79_v14 = vld [vmem:[#allocation5] sm:$0xff]  ;;  %v80_v15 = vld [vmem:[#allocation5 + $0x8] sm:$0xff]  ;;  %v81_v16 = vld [vmem:[#allocation5 + $0x10] sm:$0xff]  ;;  %vm213_vm2 = vcmask 254976  }
  0x27   :  { %53 = vadd.xlane.f32.xlu0 %v52_v2  ;;  %v249_v17 = vpack.c.bf16 %v80_v15, %v79_v14  ;;  %v82_v18 = vld [vmem:[#allocation5 + $0x18] sm:$0xff]  ;;  %v228_v30 = vld [vmem:[%s397_s2] ss:$0 sm:$0xff]  ;;  %vm220_vm3 = vcmask 1024  }
  0x28   :  { %v253_v19 = vpack.c.bf16 %v82_v18, %v81_v16  ;;  %v231_v59 = vld [vmem:[%s398_s3] ss:$0 sm:$0xff] }
  0x29   :  { %250 = vmatprep.subr.bf16.mxu0 %v249_v17 }
  0x2a   :  { %252 = vmatpush3.bf16.msra.mxu0 %v249_v17 }
  0x2b   :  { %56 = vadd.xlane.f32.xlu0 %v55_v3  ;;  %254 = vmatprep.subr.bf16.mxu0 %v253_v19  ;;  %v218_v3 = vstv %s399_s4 }
  0x2e   :  { %256 = vmatpush3.bf16.msra.mxu0 %v253_v19 }
  0xb4   :  { %v54_v4 = vpop.xlane.xlu0 %53 }
  0xb5   :  { %v59_v5 = vmul.f32 0.03125, %v54_v4 }
  0xb7   :  { %v61_v6 = vsub.f32 %v49_v0, %v59_v5 }
  0xb8   :  { %v57_v7 = vpop.xlane.xlu0 %56 }
  0xb9   :  { %v60_v8 = vmul.f32 0.03125, %v57_v7  ;;  %v63_v9 = vmul.f32 %v61_v6, %v61_v6 }
  0xbb   :  { %v62_v10 = vsub.f32 %v50_v1, %v60_v8  ;;  %v65_v11 = vsel %vm51_vm0, %v63_v9, 0.0 }
  0xbc   :  { %66 = vadd.xlane.f32.xlu1 %v65_v11 }
  0xbd   :  { %v64_v12 = vmul.f32 %v62_v10, %v62_v10 }
  0xbf   :  { %v68_v13 = vsel %vm51_vm0, %v64_v12, 0.0 }
  0xc0   :  { %69 = vadd.xlane.f32.xlu1 %v68_v13 }
 0x149   :  { %v67_v20 = vpop.xlane.xlu1 %66 }
 0x14a   :  { %v71_v21 = vmul.f32 0.03125, %v67_v20 }
 0x14c   :  { %v73_v22 = vadd.f32 1e-05, %v71_v21 }
 0x14d   :  { %v70_v23 = vpop.xlane.xlu1 %69 }
 0x14e   :  { %261 = vrsqrt.f32 %v73_v22  ;;  %v72_v24 = vmul.f32 0.03125, %v70_v23 }
 0x150   :  { %v74_v25 = vadd.f32 1e-05, %v72_v24 }
 0x152   :  { %263 = vrsqrt.f32 %v74_v25 }
 0x158   :  { %v262_v26 = vpop.eup %261 }
 0x159   :  { %v77_v27 = vmul.f32 %v262_v26, %v61_v6 }
 0x15b   :  { %246 = vmatprep.mubr.msk.f32.mxu0 %vm51_vm0, %v77_v27 }
 0x15c   :  { %v264_v28 = vpop.eup %263 }
 0x15d   :  { %v78_v29 = vmul.f32 %v264_v28, %v62_v10 }
 0x15f   :  { %247 = vmatmul.mubr.msk.f32.vlgmr.msra.gmra.mrb[0].mxu0 %vm51_vm0, %v78_v29 }
 0x232   :  { %v248_v31 = vpop.f32.mrb[0].mxu0 }
 0x233   :  { %v168_v32 = vadd.f32 %v248_v31, %v228_v30  ;;  %v162_v33 = vpop.f32.mrb[1].mxu0 }
 0x234   :  { %v163_v34 = vadd.f32 %v228_v30, %v162_v33 }
 0x235   :  { %v174_v35 = vmul.f32 0.70710677, %v168_v32  ;;  %v172_v39 = vmul.f32 0.5, %v168_v32 }
 0x236   :  { %v173_v36 = vmul.f32 0.70710677, %v163_v34  ;;  %v171_v41 = vmul.f32 0.5, %v163_v34 }
 0x237   :  { %265 = verf.f32 %v174_v35 }
 0x238   :  { %267 = verf.f32 %v173_v36 }
 0x241   :  { %v266_v37 = vpop.eup %265 }
 0x242   :  { %v268_v38 = vpop.eup %267  ;;  %v178_v40 = vadd.f32 1.0, %v266_v37 }
 0x243   :  { %v177_v42 = vadd.f32 1.0, %v268_v38 }
 0x244   :  { %v180_v43 = vmul.f32 %v178_v40, %v172_v39 }
 0x245   :  { %v179_v44 = vmul.f32 %v177_v42, %v171_v41 }
 0x246   :  { %v188_v45 = vsel %vm51_vm0, %v180_v43, 0.0 }
 0x247   :  { %v189_v46 = vrot.slane %v188_v45, 4  ;;  %v181_v47 = vsel %vm51_vm0, %v179_v44, 0.0 }
 0x248   :  { %v182_v48 = vrot.slane %v181_v47, 4 }
 0x249   :  { %v190_v49 = vadd.f32 %v189_v46, %v188_v45 }
 0x24a   :  { %v183_v50 = vadd.f32 %v182_v48, %v181_v47 }
 0x24b   :  { %v191_v51 = vrot.slane %v190_v49, 2 }
 0x24c   :  { %v184_v52 = vrot.slane %v183_v50, 2 }
 0x24d   :  { %v192_v53 = vadd.f32 %v191_v51, %v190_v49 }
 0x24e   :  { %v185_v54 = vadd.f32 %v184_v52, %v183_v50 }
 0x24f   :  { %v193_v55 = vrot.slane %v192_v53, 1 }
 0x250   :  { %v186_v56 = vrot.slane %v185_v54, 1 }
 0x251   :  { %v194_v57 = vadd.f32 %v193_v55, %v192_v53 }
 0x252   :  { %v187_v58 = vadd.f32 %v186_v56, %v185_v54 }
 0x253   :  { %v197_v60 = vmul.f32 0.125, %v194_v57 }
 0x254   :  { %v196_v61 = vmul.f32 0.125, %v187_v58 }
 0x255   :  { %v206_v62 = vmul.f32 %v231_v59, %v197_v60 }
 0x256   :  { %v205_v63 = vmul.f32 %v231_v59, %v196_v61 }
 0x257   :  { %v209_v0 = vrot.slane %v206_v62, 7 }
 0x259   :  { %v211_v1 = vsel %vm210_vm1, %v209_v0, %v205_v63 }
 0x25a   :  { %v214_v2 = vsel %vm213_vm2, %v211_v1, 0.0 }
 0x25b   :  { %215 = vadd.xlane.f32.xlu0 %v214_v2 }
 0x2e8   :  { %v216_v4 = vpop.xlane.xlu0 %215 }
 0x2e9   :  { %v219_v5 = vadd.f32 %v218_v3, %v216_v4 }
 0x2eb   :  { %221 = vst.msk [vmem:[%s400_s5] sm:$0x3] %vm220_vm3, %v219_v5 }
 0x2ec   :  { %226 = vsyncpa [#allocation4], 1 }
 0x2ed   :  { %227 = vsyncpa [#allocation6], 1 }

</bundles_post_ra>
